<compile_context>
chip_gen: v6e
topology: v6e:2x2x1
jax: 0.10.0
libtpu: 0.0.40
codegen_flags: <defaults>
</compile_context>

<pallas_src>
import functools
import math

import jax
import jax.numpy as jnp
from jax.experimental import pallas as pl
from jax.experimental.pallas import tpu as pltpu


_GRIDLESS_MAX_B = 1024        # whole-array VMEM path for small batches
_TARGET_TILE_B = 1024         # ~1024-row tiles on the grid path


def _round_up(x, m):
    return ((x + m - 1) // m) * m


def _auto_tile_b(B):
    if B <= _GRIDLESS_MAX_B:
        return B  # -> grid-less path
    # Aim for ~1024-row tiles but keep an even tile count so the "parallel"
    # batch axis still splits across v7x's two TensorCores (v5e/v6e: 1 TC,
    # bigger tiles are simply better there).
    pairs = max(1, -(-B // (2 * _TARGET_TILE_B)))
    return _round_up(-(-B // (2 * pairs)), 8)


def _gru_actor_kernel(x_ref, h_ref,
                      w_fc_ref, b_fc_ref,
                      w_ih_ref, b_ih_ref,
                      w_hh_ref, b_hh_ref,
                      w_out_ref, b_out_ref,
                      act_ref, h_out_ref, *, H, Gp):
    # own_fc: Linear(actor_dim[0] -> 64) + ReLU                 (1 MXU push)
    x = x_ref[...].astype(jnp.bfloat16)
    own_e = jnp.dot(x, w_fc_ref[...], preferred_element_type=jnp.float32)
    own_e = jnp.maximum(own_e + b_fc_ref[...], 0.0)

    h_in = h_ref[...].astype(jnp.float32)

    # GRUCell: gates packed [r, z, n], each lane-padded to a 128-lane slot so
    # every slice below starts at lane offset 0 (no XLU relayouts).
    gi = jnp.dot(own_e.astype(jnp.bfloat16), w_ih_ref[...],
                 preferred_element_type=jnp.float32) + b_ih_ref[...]
    gh = jnp.dot(h_ref[...].astype(jnp.bfloat16), w_hh_ref[...],
                 preferred_element_type=jnp.float32) + b_hh_ref[...]

    r = jax.nn.sigmoid(gi[:, 0:H] + gh[:, 0:H])
    z = jax.nn.sigmoid(gi[:, Gp:Gp + H] + gh[:, Gp:Gp + H])
    n = jnp.tanh(gi[:, 2 * Gp:2 * Gp + H] + r * gh[:, 2 * Gp:2 * Gp + H])
    h_new = (1.0 - z) * n + z * h_in

    # own_fc_outlay: Linear(64 -> n_actions) + Tanh              (1 MXU push)
    a = jnp.dot(h_new.astype(jnp.bfloat16), w_out_ref[...],
                preferred_element_type=jnp.float32) + b_out_ref[...]
    act_ref[...] = jnp.tanh(a).astype(act_ref.dtype)
    h_out_ref[...] = h_new.astype(h_out_ref.dtype)


def gru_actor_forward(cur_state, history_hidden_state, packed, *, tile_b=None):
    """Fused forward on packed params (see pack_params).

    Small batch: grid-less, whole-array VMEM blocks, one step.
    Large batch: 1-D 'parallel' grid over batch tiles (ragged last block left
    to Pallas — no wrapper pad/slice), all weights VMEM-resident.
    Output dtypes follow the inputs: bf16 hidden in -> bf16 hidden out.
    """
    H = packed["w_hh"].shape[0]
    Gp = packed["w_hh"].shape[1] // 3
    n_actions = packed["w_out"].shape[1]

    h_in = history_hidden_state.reshape(-1, H)
    B = cur_state.shape[0]
    d0 = cur_state.shape[1]

    kernel = functools.partial(_gru_actor_kernel, H=H, Gp=Gp)
    weight_args = (packed["w_fc"], packed["b_fc"],
                   packed["w_ih"], packed["b_ih"],
                   packed["w_hh"], packed["b_hh"],
                   packed["w_out"], packed["b_out"])
    out_shape = (jax.ShapeDtypeStruct((B, n_actions), cur_state.dtype),
                 jax.ShapeDtypeStruct((B, H), h_in.dtype))

    if tile_b is None:
        tile_b = _auto_tile_b(B)

    if B <= tile_b:
        # Small / per-timestep batch: whole-array VMEM blocks, single step.
        vmem = pl.BlockSpec(memory_space=pltpu.MemorySpace.VMEM)
        inputs = (cur_state, h_in) + weight_args
        return pl.pallas_call(
            kernel,
            out_shape=out_shape,
            in_specs=[vmem] * len(inputs),
            out_specs=(vmem, vmem),
        )(*inputs)

    # Large batch: 1-D parallel grid over batch tiles; weights resident.
    tile_b = _round_up(min(tile_b, B), 8)
    nb = pl.cdiv(B, tile_b)  # ragged last block: OOB rows masked on write

    def resident(arr):
        # Full-array block, same block index every step -> stays in VMEM.
        return pl.BlockSpec(arr.shape, lambda i: (0,) * arr.ndim)

    in_specs = [
        pl.BlockSpec((tile_b, d0), lambda i: (i, 0)),
        pl.BlockSpec((tile_b, H), lambda i: (i, 0)),
    ] + [resident(a) for a in weight_args]

    out_specs = (pl.BlockSpec((tile_b, n_actions), lambda i: (i, 0)),
                 pl.BlockSpec((tile_b, H), lambda i: (i, 0)))

    return pl.pallas_call(
        kernel,
        out_shape=out_shape,
        grid=(nb,),
        in_specs=in_specs,
        out_specs=out_specs,
        compiler_params=pltpu.CompilerParams(
            dimension_semantics=("parallel",)),
    )(cur_state, h_in, *weight_args)


def init_params(key, actor_dim0, n_actions, hidden):
    """PyTorch-style default init (U(-1/sqrt(fan_in), 1/sqrt(fan_in)) for
    nn.Linear, U(-1/sqrt(hidden), 1/sqrt(hidden)) for nn.GRUCell).
    Logical layout: weights (in_features, out_features); GRU gates packed
    [r, z, n], f32 everywhere (this is the "source of truth" param set)."""
    def uniform(k, shape, bound):
        return jax.random.uniform(k, shape, jnp.float32, -bound, bound)

    k = jax.random.split(key, 8)
    fc_b = 1.0 / math.sqrt(actor_dim0)
    gru_b = 1.0 / math.sqrt(hidden)
    out_b = 1.0 / math.sqrt(64)   # own_fc_outlay is Linear(64, n_actions)

    return {
        "w_fc": uniform(k[0], (actor_dim0, 64), fc_b),
        "b_fc": uniform(k[1], (1, 64), fc_b),
        "w_ih": uniform(k[2], (64, 3 * hidden), gru_b),
        "b_ih": uniform(k[3], (1, 3 * hidden), gru_b),
        "w_hh": uniform(k[4], (hidden, 3 * hidden), gru_b),
        "b_hh": uniform(k[5], (1, 3 * hidden), gru_b),
        "w_out": uniform(k[6], (hidden, n_actions), out_b),
        "b_out": uniform(k[7], (1, n_actions), out_b),
    }


def pack_params(params):
    """One-time wrapper-side packing for the kernel:
      * each GRU gate lane-padded to its own 128-lane slot (zero columns), so
        every in-kernel gate slice starts at lane offset 0,
      * MXU-operand weights cast to bf16 (biases stay f32)."""
    H = params["w_hh"].shape[0]
    Gp = _round_up(H, 128)
    pad = Gp - H
    mxu_dtype = jnp.bfloat16

    def pad_gates(a):          # (K, 3H) -> (K, 3*Gp)
        K = a.shape[0]
        a3 = a.reshape(K, 3, H)
        a3 = jnp.pad(a3, ((0, 0), (0, 0), (0, pad)))
        return a3.reshape(K, 3 * Gp)

    return {
        "w_fc": params["w_fc"].astype(mxu_dtype),
        "b_fc": params["b_fc"].astype(jnp.float32),
        "w_ih": pad_gates(params["w_ih"]).astype(mxu_dtype),
        "b_ih": pad_gates(params["b_ih"]).astype(jnp.float32),
        "w_hh": pad_gates(params["w_hh"]).astype(mxu_dtype),
        "b_hh": pad_gates(params["b_hh"]).astype(jnp.float32),
        "w_out": params["w_out"].astype(mxu_dtype),
        "b_out": params["b_out"].astype(jnp.float32),
    }


def reference_forward(cur_state, history_hidden_state, params):
    """Plain-JAX f32 reference matching torch.nn.GRUCell semantics."""
    H = params["w_hh"].shape[0]
    own_e = jax.nn.relu(cur_state @ params["w_fc"] + params["b_fc"])
    h_in = history_hidden_state.reshape(-1, H)
    gi = own_e @ params["w_ih"] + params["b_ih"]
    gh = h_in @ params["w_hh"] + params["b_hh"]
    r = jax.nn.sigmoid(gi[:, :H] + gh[:, :H])
    z = jax.nn.sigmoid(gi[:, H:2 * H] + gh[:, H:2 * H])
    n = jnp.tanh(gi[:, 2 * H:] + r * gh[:, 2 * H:])
    h = (1.0 - z) * n + z * h_in
    action = jnp.tanh(h @ params["w_out"] + params["b_out"])
    return action, h


if __name__ == "__main__":
    # Shapes consistent with the module: cur_state (B, actor_dim[0]),
    # history_hidden_state (B, H).  own_fc_outlay is Linear(64, ...), so the
    # hidden state size is 64 in this model.
    B = 8
    actor_dim = (6,)
    n_actions = 2
    H = 64

    key = jax.random.PRNGKey(0)
    kp, ks, kh = jax.random.split(key, 3)
    params = init_params(kp, actor_dim[0], n_actions, H)
    packed = pack_params(params)

    cur_state = jax.random.normal(ks, (B, actor_dim[0]), jnp.float32)
    hidden = jax.random.normal(kh, (B, H), jnp.float32)

    # Small-batch (grid-less) path.
    act, h_new = gru_actor_forward(cur_state, hidden, packed)
    jax.block_until_ready((act, h_new))
    act_ref, h_ref = reference_forward(cur_state, hidden, params)
    assert act.shape == (B, n_actions) and h_new.shape == (B, H)
    assert jnp.allclose(act, act_ref, atol=3e-2, rtol=2e-2), "action mismatch"
    assert jnp.allclose(h_new, h_ref, atol=3e-2, rtol=2e-2), "hidden mismatch"

    # Larger batch: auto-derived tile size, batch-tiled pipelined path with a
    # ragged last block (no wrapper-side pad / slice).
    B2 = 3000
    ks2, kh2 = jax.random.split(jax.random.PRNGKey(1))
    cur2 = jax.random.normal(ks2, (B2, actor_dim[0]), jnp.float32)
    hid2 = jax.random.normal(kh2, (B2, H), jnp.float32)
    act2, h2 = gru_actor_forward(cur2, hid2, packed)          # tile_b auto
    jax.block_until_ready((act2, h2))
    act2_ref, h2_ref = reference_forward(cur2, hid2, params)
    assert act2.shape == (B2, n_actions) and h2.shape == (B2, H)
    assert jnp.allclose(act2, act2_ref, atol=3e-2, rtol=2e-2), "tiled action mismatch"
    assert jnp.allclose(h2, h2_ref, atol=3e-2, rtol=2e-2), "tiled hidden mismatch"

    # bf16 hidden-state I/O on the tiled path (dominant HBM bytes ~halved),
    # explicit small tile to also exercise a different ragged split.
    hid2_bf = hid2.astype(jnp.bfloat16)
    act3, h3 = gru_actor_forward(cur2, hid2_bf, packed, tile_b=256)
    jax.block_until_ready((act3, h3))
    act3_ref, h3_ref = reference_forward(cur2, hid2_bf.astype(jnp.float32), params)
    assert h3.dtype == jnp.bfloat16 and h3.shape == (B2, H)
    assert jnp.allclose(act3, act3_ref, atol=6e-2, rtol=5e-2), "bf16-h action mismatch"
    assert jnp.allclose(h3.astype(jnp.float32), h3_ref, atol=6e-2, rtol=5e-2), \
        "bf16-h hidden mismatch"

    print("KERNEL_OK")
</pallas_src>

<mosaic_0001>
module attributes {stable_mosaic.version = 11 : i64} {
  func.func @_gru_actor_kernel(%arg0: memref<8x6xf32, #tpu.memory_space<vmem>>, %arg1: memref<8x64xf32, #tpu.memory_space<vmem>>, %arg2: memref<6x64xbf16, #tpu.memory_space<vmem>>, %arg3: memref<1x64xf32, #tpu.memory_space<vmem>>, %arg4: memref<64x384xbf16, #tpu.memory_space<vmem>>, %arg5: memref<1x384xf32, #tpu.memory_space<vmem>>, %arg6: memref<64x384xbf16, #tpu.memory_space<vmem>>, %arg7: memref<1x384xf32, #tpu.memory_space<vmem>>, %arg8: memref<64x2xbf16, #tpu.memory_space<vmem>>, %arg9: memref<1x2xf32, #tpu.memory_space<vmem>>, %arg10: memref<8x2xf32, #tpu.memory_space<vmem>>, %arg11: memref<8x64xf32, #tpu.memory_space<vmem>>) attributes {dimension_semantics = [], scalar_prefetch = 0 : i64, scratch_operands = 0 : i64, tpu.core_type = #tpu.core_type<tc>} {
    %c0 = arith.constant 0 : index
    %c0_0 = arith.constant 0 : index
    %0 = vector.load %arg0[%c0, %c0_0] : memref<8x6xf32, #tpu.memory_space<vmem>>, vector<8x6xf32>
    %1 = arith.truncf %0 : vector<8x6xf32> to vector<8x6xbf16>
    %c0_1 = arith.constant 0 : index
    %c0_2 = arith.constant 0 : index
    %2 = vector.load %arg2[%c0_1, %c0_2] : memref<6x64xbf16, #tpu.memory_space<vmem>>, vector<6x64xbf16>
    %cst = arith.constant dense<0.000000e+00> : vector<8x64xf32>
    %3 = tpu.matmul %1, %2, %cst {dimension_numbers = #tpu.dot_dimension_numbers<[1], [0], [0], [1], [0, 0, 1, 1], [], []>} : vector<8x6xbf16>, vector<6x64xbf16>, vector<8x64xf32> -> vector<8x64xf32>
    %c0_3 = arith.constant 0 : index
    %c0_4 = arith.constant 0 : index
    %4 = vector.load %arg3[%c0_3, %c0_4] : memref<1x64xf32, #tpu.memory_space<vmem>>, vector<1x64xf32>
    %5 = vector.broadcast %4 : vector<1x64xf32> to vector<8x64xf32>
    %6 = arith.addf %3, %5 : vector<8x64xf32>
    %cst_5 = arith.constant 0.000000e+00 : f32
    %7 = vector.broadcast %cst_5 : f32 to vector<8x64xf32>
    %8 = arith.maximumf %6, %7 : vector<8x64xf32>
    %c0_6 = arith.constant 0 : index
    %c0_7 = arith.constant 0 : index
    %9 = vector.load %arg1[%c0_6, %c0_7] : memref<8x64xf32, #tpu.memory_space<vmem>>, vector<8x64xf32>
    %10 = arith.truncf %8 : vector<8x64xf32> to vector<8x64xbf16>
    %c0_8 = arith.constant 0 : index
    %c0_9 = arith.constant 0 : index
    %11 = vector.load %arg4[%c0_8, %c0_9] : memref<64x384xbf16, #tpu.memory_space<vmem>>, vector<64x384xbf16>
    %cst_10 = arith.constant dense<0.000000e+00> : vector<8x384xf32>
    %12 = tpu.matmul %10, %11, %cst_10 {dimension_numbers = #tpu.dot_dimension_numbers<[1], [0], [0], [1], [0, 0, 1, 1], [], []>} : vector<8x64xbf16>, vector<64x384xbf16>, vector<8x384xf32> -> vector<8x384xf32>
    %c0_11 = arith.constant 0 : index
    %c0_12 = arith.constant 0 : index
    %13 = vector.load %arg5[%c0_11, %c0_12] : memref<1x384xf32, #tpu.memory_space<vmem>>, vector<1x384xf32>
    %14 = vector.broadcast %13 : vector<1x384xf32> to vector<8x384xf32>
    %15 = arith.addf %12, %14 : vector<8x384xf32>
    %c0_13 = arith.constant 0 : index
    %c0_14 = arith.constant 0 : index
    %16 = vector.load %arg1[%c0_13, %c0_14] : memref<8x64xf32, #tpu.memory_space<vmem>>, vector<8x64xf32>
    %17 = arith.truncf %16 : vector<8x64xf32> to vector<8x64xbf16>
    %c0_15 = arith.constant 0 : index
    %c0_16 = arith.constant 0 : index
    %18 = vector.load %arg6[%c0_15, %c0_16] : memref<64x384xbf16, #tpu.memory_space<vmem>>, vector<64x384xbf16>
    %cst_17 = arith.constant dense<0.000000e+00> : vector<8x384xf32>
    %19 = tpu.matmul %17, %18, %cst_17 {dimension_numbers = #tpu.dot_dimension_numbers<[1], [0], [0], [1], [0, 0, 1, 1], [], []>} : vector<8x64xbf16>, vector<64x384xbf16>, vector<8x384xf32> -> vector<8x384xf32>
    %c0_18 = arith.constant 0 : index
    %c0_19 = arith.constant 0 : index
    %20 = vector.load %arg7[%c0_18, %c0_19] : memref<1x384xf32, #tpu.memory_space<vmem>>, vector<1x384xf32>
    %21 = vector.broadcast %20 : vector<1x384xf32> to vector<8x384xf32>
    %22 = arith.addf %19, %21 : vector<8x384xf32>
    %23 = vector.extract_strided_slice %15 {offsets = [0, 0], sizes = [8, 64], strides = [1, 1]} : vector<8x384xf32> to vector<8x64xf32>
    %24 = vector.extract_strided_slice %22 {offsets = [0, 0], sizes = [8, 64], strides = [1, 1]} : vector<8x384xf32> to vector<8x64xf32>
    %25 = arith.addf %23, %24 : vector<8x64xf32>
    %26 = arith.negf %25 : vector<8x64xf32>
    %27 = math.exp %26 : vector<8x64xf32>
    %cst_20 = arith.constant 1.000000e+00 : f32
    %28 = vector.broadcast %cst_20 : f32 to vector<8x64xf32>
    %29 = arith.addf %28, %27 : vector<8x64xf32>
    %30 = arith.divf %28, %29 : vector<8x64xf32>
    %31 = vector.extract_strided_slice %15 {offsets = [0, 128], sizes = [8, 64], strides = [1, 1]} : vector<8x384xf32> to vector<8x64xf32>
    %32 = vector.extract_strided_slice %22 {offsets = [0, 128], sizes = [8, 64], strides = [1, 1]} : vector<8x384xf32> to vector<8x64xf32>
    %33 = arith.addf %31, %32 : vector<8x64xf32>
    %34 = arith.negf %33 : vector<8x64xf32>
    %35 = math.exp %34 : vector<8x64xf32>
    %cst_21 = arith.constant 1.000000e+00 : f32
    %36 = vector.broadcast %cst_21 : f32 to vector<8x64xf32>
    %37 = arith.addf %36, %35 : vector<8x64xf32>
    %38 = arith.divf %36, %37 : vector<8x64xf32>
    %39 = vector.extract_strided_slice %15 {offsets = [0, 256], sizes = [8, 64], strides = [1, 1]} : vector<8x384xf32> to vector<8x64xf32>
    %40 = vector.extract_strided_slice %22 {offsets = [0, 256], sizes = [8, 64], strides = [1, 1]} : vector<8x384xf32> to vector<8x64xf32>
    %41 = arith.mulf %30, %40 : vector<8x64xf32>
    %42 = arith.addf %39, %41 : vector<8x64xf32>
    %43 = math.tanh %42 : vector<8x64xf32>
    %cst_22 = arith.constant 1.000000e+00 : f32
    %44 = vector.broadcast %cst_22 : f32 to vector<8x64xf32>
    %45 = arith.subf %44, %38 : vector<8x64xf32>
    %46 = arith.mulf %45, %43 : vector<8x64xf32>
    %47 = arith.mulf %38, %9 : vector<8x64xf32>
    %48 = arith.addf %46, %47 : vector<8x64xf32>
    %49 = arith.truncf %48 : vector<8x64xf32> to vector<8x64xbf16>
    %c0_23 = arith.constant 0 : index
    %c0_24 = arith.constant 0 : index
    %50 = vector.load %arg8[%c0_23, %c0_24] : memref<64x2xbf16, #tpu.memory_space<vmem>>, vector<64x2xbf16>
    %cst_25 = arith.constant dense<0.000000e+00> : vector<8x2xf32>
    %51 = tpu.matmul %49, %50, %cst_25 {dimension_numbers = #tpu.dot_dimension_numbers<[1], [0], [0], [1], [0, 0, 1, 1], [], []>} : vector<8x64xbf16>, vector<64x2xbf16>, vector<8x2xf32> -> vector<8x2xf32>
    %c0_26 = arith.constant 0 : index
    %c0_27 = arith.constant 0 : index
    %52 = vector.load %arg9[%c0_26, %c0_27] : memref<1x2xf32, #tpu.memory_space<vmem>>, vector<1x2xf32>
    %53 = vector.broadcast %52 : vector<1x2xf32> to vector<8x2xf32>
    %54 = arith.addf %51, %53 : vector<8x2xf32>
    %55 = math.tanh %54 : vector<8x2xf32>
    %c0_28 = arith.constant 0 : index
    %c0_29 = arith.constant 0 : index
    %56 = vector.load %arg10[%c0_28, %c0_29] : memref<8x2xf32, #tpu.memory_space<vmem>>, vector<8x2xf32>
    tpu.vector_store %arg10[%c0_28, %c0_29], %55 {strides = array<i32>} : memref<8x2xf32, #tpu.memory_space<vmem>>, vector<8x2xf32>,
    %c0_30 = arith.constant 0 : index
    %c0_31 = arith.constant 0 : index
    %57 = vector.load %arg11[%c0_30, %c0_31] : memref<8x64xf32, #tpu.memory_space<vmem>>, vector<8x64xf32>
    tpu.vector_store %arg11[%c0_30, %c0_31], %48 {strides = array<i32>} : memref<8x64xf32, #tpu.memory_space<vmem>>, vector<8x64xf32>,
    return
  }
}

</mosaic_0001>

<bundles_post_ra>
// kernel: tpu_custom_call.1
= control target key start
LH: loop header
LB: loop body
LE: loop exit
PB: predicated region body
PF: predicated region fallthrough
CT: control target
= control target key end

     0   :  { %17 = vsyncpa [#allocation3], 0  ;;  %s984_s0 = inlined_call_operand.vmem [shape: f32[8,6], index: 0, kind: input, shape index: {}]   ;;  %s985_s1 = inlined_call_operand.vmem [shape: f32[8,64], index: 1, kind: input, shape index: {}]   ;;  %s986_s2 = inlined_call_operand.vmem [shape: bf16[6,64], index: 2, kind: input, shape index: {}]   ;;  %s987_s3 = inlined_call_operand.vmem [shape: f32[1,64], index: 3, kind: input, shape index: {}]   ;;  %s988_s4 = inlined_call_operand.hbm [shape: bf16[64,384], index: 4, kind: input, shape index: {}]   ;;  %s989_s5 = inlined_call_operand.vmem [shape: f32[1,384], index: 5, kind: input, shape index: {}]   ;;  %s990_s6 = inlined_call_operand.hbm [shape: bf16[64,384], index: 6, kind: input, shape index: {}]   ;;  %s991_s7 = inlined_call_operand.vmem [shape: f32[1,384], index: 7, kind: input, shape index: {}]   ;;  %s992_s8 = inlined_call_operand.vmem [shape: bf16[64,2], index: 8, kind: input, shape index: {}]   ;;  %s993_s9 = inlined_call_operand.vmem [shape: f32[1,2], index: 9, kind: input, shape index: {}]   ;;  %s994_s10 = inlined_call_operand.vmem [shape: f32[8,2], index: 10, kind: output, shape index: {0}]   ;;  %s995_s11 = inlined_call_operand.hbm [shape: f32[8,64], index: 11, kind: output, shape index: {1}]  }
   0x1   :  { %18 = vsyncpa [#allocation6], 0 }
   0x2   :  { %19 = vsyncpa [#allocation4], 0  ;;  %s839_s17 = smov [#allocation2]  }
   0x3   :  { %s33_s18 = sshll.u32 %s839_s17, 4  ;;  %s34_s18 = int_to_ptr.vmem [resolvable:$true] %s33_s18 }
   0x4   :  { %s781_s19 = scalar_lea.vmem %s34_s18, 1536  ;;  %p786_p1 = scmp.lt.s32.totalorder %s34_s18, %s34_s18 }
   0x5   :  { %p782_p0 = scmp.ne.s32.totalorder %s34_s18, %s781_s19  ;;  %p787_p2 = scmp.lt.s32.totalorder %s781_s19, %s781_s19 }
   0x7   :  { %p788_p3 = por %p787_p2, %p786_p1 }
   0x9   :  { %p789_p4 = pnand %p788_p3, %p782_p0 }
   0xb   :  { %792 = shalt.err (!%p789_p4)
}
   0xc   :  { %s840_s20 = smov 192   ;;  %s841_s21 = smov 12  }
   0xd   :  { %39 = dma.hbm_to_vmem [thread:$0]  %s988_s4, 1536, %s34_s18, [#allocation3], %s840_s20, %s840_s20, %s841_s21  }
   0xe   :  { %s842_s24 = smov [#allocation5]  }
   0xf   :  { %s47_s25 = sshll.u32 %s842_s24, 4  ;;  %s48_s25 = int_to_ptr.vmem [resolvable:$true] %s47_s25 }
  0x10   :  { %s801_s26 = scalar_lea.vmem %s48_s25, 1536  ;;  %p806_p6 = scmp.lt.s32.totalorder %s48_s25, %s48_s25 }
  0x11   :  { %p802_p5 = scmp.ne.s32.totalorder %s48_s25, %s801_s26  ;;  %p807_p7 = scmp.lt.s32.totalorder %s801_s26, %s801_s26 }
  0x13   :  { %p808_p8 = por %p807_p7, %p806_p6 }
  0x15   :  { %p809_p9 = pnand %p808_p8, %p802_p5 }
  0x17   :  { %812 = shalt.err (!%p809_p9)
}
  0x18   :  { %53 = dma.hbm_to_vmem [thread:$0]  %s990_s6, 1536, %s48_s25, [#allocation6], %s840_s20, %s840_s20, %s841_s21  }
  0x19   :  { %833 = dma.done.wait [#allocation3], 1536  }
  0x1a   :  { %834 = vsyncadd [#allocation3], 4294965760 }
  0x1b   :  { %835 = dma.done.wait [#allocation6], 1536  }
  0x1c   :  { %836 = vsyncadd [#allocation6], 4294965760  ;;  %v843_v0 = vmov 0.0   ;;  %vm844_vm0 = vmmov 0   ;;  %vm81_vm1 = vcmask 1042432   ;;  %v67_v2 = vld [vmem:[%s984_s0] sm:$0xff]  ;;  %v146_v46 = vlaneseq }
  0x1d   :  { %675 = vmatprep.subr.bf16.mxu0 %v843_v0  ;;  %677 = vmatprep.mubr.msk.bf16.mxu0 %vm844_vm0, %v843_v0  ;;  %v69_v1 = vld [vmem:[%s986_s2] sm:$0x7]  ;;  %vm77_vm2 = vcmask 48128   ;;  %v68_v4 = vpack.c.bf16 %v67_v2, %v67_v2  ;;  %v725_v5 = vld [vmem:[#allocation2 + $0x4c] ss:$12 sps:$4 sm:$0xff]   ;;  %v845_v18 = vmov 0  }
  0x1e   :  { %v83_v3 = vsel %vm81_vm1, %v69_v1, 0  ;;  %v727_v6 = vld [vmem:[#allocation2 + $0x48] ss:$12 sps:$4 sm:$0xff]   ;;  %v728_v7 = vld [vmem:[#allocation2 + $0x50] ss:$12 sps:$4 sm:$0xff]   ;;  %237 = vmatprep.subr.bf16.mxu1 %v725_v5  ;;  %261 = vmatprep.mubr.bf16.mxu1 %v845_v18  ;;  %vm225_vm3 = vcmask 523264  }
  0x1f   :  { %676 = vmatpush3.bf16.msra.mxu0 %v83_v3  ;;  %v729_v8 = vld [vmem:[#allocation2 + $0x34] ss:$12 sps:$4 sm:$0xff]   ;;  %238 = vmatpush1.bf16.msra.mxu1 %v727_v6  ;;  %v731_v9 = vld [vmem:[#allocation2 + $0x30] ss:$12 sps:$4 sm:$0xff]   ;;  %v732_v10 = vld [vmem:[#allocation2 + $0x38] ss:$12 sps:$4 sm:$0xff]  }
  0x20   :  { %681 = vmatprep.subr.bf16.mxu0 %v843_v0  ;;  %239 = vmatprep.subr.bf16.mxu1 %v729_v8  ;;  %v733_v11 = vld [vmem:[#allocation2 + $0x1c] ss:$12 sps:$4 sm:$0xff]   ;;  %v735_v12 = vld [vmem:[#allocation2 + $0x18] ss:$12 sps:$4 sm:$0xff]   ;;  %v736_v13 = vld [vmem:[#allocation2 + $0x20] ss:$12 sps:$4 sm:$0xff]  }
  0x21   :  { %v737_v14 = vld [vmem:[#allocation2 + $0x4] ss:$12 sps:$4 sm:$0xff]   ;;  %v739_v15 = vld [vmem:[#allocation2] ss:$12 sps:$4 sm:$0xff]   ;;  %v740_v16 = vld [vmem:[#allocation2 + $0x8] ss:$12 sps:$4 sm:$0xff]  }
  0x22   :  { %678 = vmatmul.mubr.msk.bf16.vlgmr.msra.gmra.mxu0 %vm77_vm2, %v68_v4  ;;  %v743_v17 = vld [vmem:[#allocation5 + $0x4c] ss:$12 sps:$4 sm:$0xff]   ;;  %v620_v19 = vld [vmem:[%s987_s3] ss:$0 sm:$0xff]  ;;  %v741_v25 = vld [vmem:[#allocation5 + $0x48] ss:$12 sps:$4 sm:$0xff]  }
  0x23   :  { %682 = vmatpush3.bf16.msra.mxu0 %v728_v7  ;;  %689 = vmatprep.mubr.msk.bf16.mxu0 %vm844_vm0, %v843_v0  ;;  %v746_v27 = vld [vmem:[#allocation5 + $0x34] ss:$12 sps:$4 sm:$0xff]   ;;  %v753_v28 = vld [vmem:[#allocation5 + $0x50] ss:$12 sps:$4 sm:$0xff]   ;;  %v754_v32 = vld [vmem:[#allocation5 + $0x38] ss:$12 sps:$4 sm:$0xff]  }
  0x24   :  { %683 = vmatprep.subr.bf16.mxu0 %v843_v0  ;;  %240 = vmatpush1.bf16.msra.mxu1 %v731_v9  ;;  %v744_v30 = vld [vmem:[#allocation5 + $0x30] ss:$12 sps:$4 sm:$0xff]   ;;  %v747_v33 = vld [vmem:[#allocation5 + $0x18] ss:$12 sps:$4 sm:$0xff]   ;;  %v755_v35 = vld [vmem:[#allocation5 + $0x20] ss:$12 sps:$4 sm:$0xff]  }
  0x25   :  { %241 = vmatprep.subr.bf16.mxu1 %v733_v11  ;;  %v749_v31 = vld [vmem:[#allocation5 + $0x1c] ss:$12 sps:$4 sm:$0xff]   ;;  %v752_v34 = vld [vmem:[#allocation5 + $0x4] ss:$12 sps:$4 sm:$0xff]   ;;  %v750_v36 = vld [vmem:[#allocation5] ss:$12 sps:$4 sm:$0xff]  }
  0x26   :  { %v941_v37 = vld [vmem:[%s985_s1] sm:$0xff]  ;;  %v756_v38 = vld [vmem:[#allocation5 + $0x8] ss:$12 sps:$4 sm:$0xff]   ;;  %v757_v40 = vld [vmem:[%s992_s8 + $0x18] sm:$0xff]   ;;  %v147_v51 = vshrl.u32 %v146_v46, 7 }
  0x27   :  { %684 = vmatpush3.bf16.msra.mxu0 %v732_v10  ;;  %v310_v39 = vpack.c.bf16 %v941_v37, %v941_v37  ;;  %v758_v41 = vld [vmem:[%s992_s8 + $0x10] sm:$0xff]   ;;  %v759_v42 = vld [vmem:[%s992_s8 + $0x8] sm:$0xff]   ;;  %v760_v43 = vld [vmem:[%s992_s8] sm:$0xff]  }
  0x28   :  { %685 = vmatprep.subr.bf16.mxu0 %v843_v0  ;;  %242 = vmatpush1.bf16.msra.mxu1 %v735_v12  ;;  %v148_v54 = vsub.s32 0, %v147_v51  ;;  %v144_v55 = vld [vmem:[%s989_s5] sm:$0x7]  ;;  %v152_v59 = vsub.s32 1, %v147_v51  ;;  %s846_s5 = smov [#allocation7]  }
  0x29   :  { %243 = vmatprep.subr.bf16.mxu1 %v737_v14  ;;  %v327_v56 = vld [vmem:[%s991_s7] sm:$0x7]  ;;  %s608_s7 = sshll.u32 %s846_s5, 4  ;;  %s609_s7 = int_to_ptr.vmem [resolvable:$true] %s608_s7 }
  0x2a   :  { %v149_v57 = vrot.slane %v144_v55, %v148_v54  ;;  %v332_v58 = vrot.slane %v327_v56, %v148_v54  ;;  %v336_v63 = vrot.slane %v327_v56, %v152_v59  ;;  %v153_v2 = vrot.slane %v144_v55, %v152_v59  ;;  %s813_s23 = scalar_lea.vmem %s609_s7, 128  ;;  %p818_p11 = scmp.lt.s32.totalorder %s609_s7, %s609_s7 }
  0x2b   :  { %686 = vmatpush3.bf16.msra.mxu0 %v736_v13  ;;  %p814_p10 = scmp.ne.s32.totalorder %s609_s7, %s813_s23  ;;  %p819_p12 = scmp.lt.s32.totalorder %s813_s23, %s813_s23 }
  0x2c   :  { %687 = vmatprep.subr.bf16.mxu0 %v843_v0  ;;  %244 = vmatpush1.bf16.msra.mxu1 %v739_v15 }
  0x2d   :  { %419 = vmatprep.subr.bf16.mxu1 %v743_v17  ;;  %p820_p13 = por %p819_p12, %p818_p11 }
  0x2f   :  { %688 = vmatpush3.bf16.msra.mxu0 %v740_v16  ;;  %v156_v16 = vsub.s32 2, %v147_v51  ;;  %p821_p0 = pnand %p820_p13, %p814_p10 }
  0x30   :  { %693 = vmatprep.subr.bf16.mxu0 %v843_v0 }
  0x31   :  { %v340_v17 = vrot.slane %v327_v56, %v156_v16 }
  0xe2   :  { %v119_v20 = vpop.f32.mrf.mxu0 }
  0xe3   :  { %v120_v21 = vadd.f32 %v620_v19, %v119_v20  ;;  %v157_v19 = vrot.slane %v144_v55, %v156_v16 }
  0xe4   :  { %v679_v22 = vpop.f32.mrf.mxu0 }
  0xe5   :  { %v125_v23 = vmax.f32 %v120_v21, 0.0 }
  0xe6   :  { %v122_v24 = vpop.f32.mrf.mxu0 }
  0xe7   :  { %v127_v26 = vpack.c.bf16 %v125_v23, %v125_v23 }
  0xe8   :  { %v680_v29 = vpop.f32.mrf.mxu0 }
  0xe9   :  { %634 = vmatmul.mubr.msk.bf16.vlgmr.msra.gmra.mxu1 %vm225_vm3, %v127_v26  ;;  %690 = vmatmul.mubr.msk.bf16.vlgmr.msra.gmra.mxu0 %vm225_vm3, %v127_v26 }
  0xea   :  { %420 = vmatpush1.bf16.msra.mxu1 %v741_v25  ;;  %443 = vmatprep.mubr.bf16.mxu1 %v845_v18 }
  0xeb   :  { %421 = vmatprep.subr.bf16.mxu1 %v746_v27  ;;  %694 = vmatpush3.bf16.msra.mxu0 %v753_v28 }
  0xec   :  { %695 = vmatprep.subr.bf16.mxu0 %v843_v0  ;;  %701 = vmatprep.mubr.msk.bf16.mxu0 %vm844_vm0, %v843_v0 }
  0xee   :  { %422 = vmatpush1.bf16.msra.mxu1 %v744_v30 }
  0xef   :  { %423 = vmatprep.subr.bf16.mxu1 %v749_v31  ;;  %696 = vmatpush3.bf16.msra.mxu0 %v754_v32 }
  0xf0   :  { %697 = vmatprep.subr.bf16.mxu0 %v843_v0 }
  0xf2   :  { %424 = vmatpush1.bf16.msra.mxu1 %v747_v33 }
  0xf3   :  { %425 = vmatprep.subr.bf16.mxu1 %v752_v34  ;;  %698 = vmatpush3.bf16.msra.mxu0 %v755_v35 }
  0xf4   :  { %699 = vmatprep.subr.bf16.mxu0 %v843_v0 }
  0xf6   :  { %426 = vmatpush1.bf16.msra.mxu1 %v750_v36 }
  0xf7   :  { %700 = vmatpush3.bf16.msra.mxu0 %v756_v38  ;;  %705 = vmatprep.subr.bf16.mxu1 %v843_v0 }
  0xf9   :  { %648 = vmatmul.mubr.msk.bf16.vlgmr.msra.gmra.mxu1 %vm225_vm3, %v310_v39 }
  0xfa   :  { %702 = vmatmul.mubr.msk.bf16.vlgmr.msra.gmra.mxu0 %vm225_vm3, %v310_v39  ;;  %713 = vmatprep.mubr.msk.bf16.mxu1 %vm844_vm0, %v843_v0 }
  0xfb   :  { %706 = vmatpush3.bf16.msra.mxu1 %v757_v40 }
  0xfc   :  { %707 = vmatprep.subr.bf16.mxu1 %v843_v0 }
  0xff   :  { %708 = vmatpush3.bf16.msra.mxu1 %v758_v41 }
 0x100   :  { %709 = vmatprep.subr.bf16.mxu1 %v843_v0 }
 0x103   :  { %710 = vmatpush3.bf16.msra.mxu1 %v759_v42 }
 0x104   :  { %711 = vmatprep.subr.bf16.mxu1 %v843_v0 }
 0x107   :  { %712 = vmatpush3.bf16.msra.mxu1 %v760_v43 }
 0x1a9   :  { %v263_v44 = vpop.f32.mrf.mxu1  ;;  %v304_v45 = vpop.f32.mrf.mxu0 }
 0x1aa   :  { %v264_v61 = vadd.f32 %v263_v44, %v149_v57  ;;  %v305_v23 = vadd.f32 %v304_v45, %v157_v19 }
 0x1ab   :  { %v265_v47 = vpop.f32.mrf.mxu1  ;;  %v691_v48 = vpop.f32.mrf.mxu0 }
 0x1ac   :  { %v266_v10 = vadd.f32 %v265_v47, %v153_v2 }
 0x1ad   :  { %v267_v49 = vpop.f32.mrf.mxu1  ;;  %v307_v50 = vpop.f32.mrf.mxu0 }
 0x1af   :  { %v268_v52 = vpop.f32.mrf.mxu1  ;;  %v692_v53 = vpop.f32.mrf.mxu0 }
 0x1b9   :  { %v445_v60 = vpop.f32.mrf.mxu1 }
 0x1ba   :  { %v446_v62 = vadd.f32 %v445_v60, %v332_v58  ;;  %v486_v0 = vpop.f32.mrf.mxu0 }
 0x1bb   :  { %v447_v1 = vpop.f32.mrf.mxu1  ;;  %v487_v21 = vadd.f32 %v486_v0, %v340_v17 }
 0x1bc   :  { %v492_v3 = vadd.f32 %v446_v62, %v264_v61  ;;  %v703_v4 = vpop.f32.mrf.mxu0  ;;  %v448_v7 = vadd.f32 %v447_v1, %v336_v63 }
 0x1bd   :  { %v449_v5 = vpop.f32.mrf.mxu1 }
 0x1be   :  { %v650_v6 = vmul.f32 -1.442695, %v492_v3  ;;  %v489_v8 = vpop.f32.mrf.mxu0  ;;  %v499_v12 = vadd.f32 %v448_v7, %v266_v10 }
 0x1bf   :  { %v450_v9 = vpop.f32.mrf.mxu1 }
 0x1c0   :  { %761 = vpow2.f32 %v650_v6  ;;  %v704_v11 = vpop.f32.mrf.mxu0  ;;  %v651_v13 = vmul.f32 -1.442695, %v499_v12 }
 0x1c2   :  { %763 = vpow2.f32 %v651_v13 }
 0x1cd   :  { %v762_v14 = vpop.eup %761 }
 0x1ce   :  { %v496_v15 = vadd.f32 1.0, %v762_v14 }
 0x1cf   :  { %v764_v18 = vpop.eup %763 }
 0x1d0   :  { %765 = vrcp.f32 %v496_v15  ;;  %v503_v20 = vadd.f32 1.0, %v764_v18 }
 0x1d2   :  { %767 = vrcp.f32 %v503_v20 }
 0x1dd   :  { %v766_v22 = vpop.eup %765 }
 0x1de   :  { %v506_v24 = vmul.f32 %v766_v22, %v487_v21 }
 0x1df   :  { %v768_v26 = vpop.eup %767 }
 0x1e0   :  { %v507_v25 = vadd.f32 %v506_v24, %v305_v23  ;;  %v509_v27 = vsub.f32 1.0, %v768_v26  ;;  %v511_v30 = vmul.f32 %v768_v26, %v941_v37 }
 0x1e2   :  { %769 = vtanh.f32 %v507_v25 }
 0x1ef   :  { %v770_v28 = vpop.eup %769 }
 0x1f0   :  { %v510_v29 = vmul.f32 %v770_v28, %v509_v27 }
 0x1f2   :  { %v512_v31 = vadd.f32 %v511_v30, %v510_v29 }
 0x1f4   :  { %v513_v32 = vpack.c.bf16 %v512_v31, %v512_v31  ;;  %599 = vst.msk [vmem:[#allocation7] sm:$0xff] %vm225_vm3, %v512_v31 }
 0x1f6   :  { %714 = vmatmul.mubr.msk.bf16.vlgmr.msra.gmra.mxu1 %vm225_vm3, %v513_v32 }
 0x1f7   :  { %824 = shalt.err (!%p821_p0)
}
 0x1f8   :  { %611 = dma.vmem_to_hbm [thread:$0]  %s609_s7, 128, %s995_s11, [#allocation4]   ;;  %v652_v33 = vld [vmem:[%s993_s9] ss:$0 sm:$0xff]  ;;  %vm597_vm4 = vcmask 15360  }
 0x2b6   :  { %v590_v34 = vpop.f32.mrf.mxu1 }
 0x2b7   :  { %v591_v35 = vadd.f32 %v652_v33, %v590_v34 }
 0x2b8   :  { %v715_v36 = vpop.f32.mrf.mxu1 }
 0x2b9   :  { %771 = vtanh.f32 %v591_v35 }
 0x2ba   :  { %v593_v37 = vpop.f32.mrf.mxu1 }
 0x2bc   :  { %v716_v38 = vpop.f32.mrf.mxu1 }
 0x2c6   :  { %v772_v39 = vpop.eup %771 }
 0x2c7   :  { %598 = vst.msk [vmem:[%s994_s10] sm:$0xff] %vm597_vm4, %v772_v39 }
 0x2c8   :  { %837 = dma.done.wait [#allocation4], 128  }
 0x2c9   :  { %838 = vsyncadd [#allocation4], 4294967168 }
 0x2ca   :  { %617 = vsyncpa [#allocation3], 1 }
 0x2cb   :  { %618 = vsyncpa [#allocation6], 1 }
 0x2cc   :  { %619 = vsyncpa [#allocation4], 1 }

</bundles_post_ra>
